<compile_context>
chip_gen: v5e
topology: v5e:2x2
jax: 0.10.0
libtpu: 0.0.40
codegen_flags: <defaults>
</compile_context>

<pallas_src>
import functools

import jax
import jax.numpy as jnp
from jax.experimental import pallas as pl
from jax.experimental.pallas import tpu as pltpu


def _round_up(x, m):
    return (x + m - 1) // m * m


def _predictor_kernel(x_ref, w_ref, b_ref, scores_ref, bbox_ref, *, nc_pad):
    # (TN, C) @ (C, K_pad) -> (TN, K_pad); f32 accumulate + f32 bias add.
    x = x_ref[...]
    if x.dtype != w_ref.dtype:
        x = x.astype(w_ref.dtype)        # in-VMEM cast; no extra HBM pass
    acc = jnp.dot(x, w_ref[...], preferred_element_type=jnp.float32) + b_ref[...]
    num_classes = scores_ref.shape[-1]
    num_bbox = bbox_ref.shape[-1]
    # Each head's columns start at a 128-aligned lane offset in the fused slab.
    scores_ref[...] = acc[:, :num_classes].astype(scores_ref.dtype)
    bbox_ref[...] = acc[:, nc_pad:nc_pad + num_bbox].astype(bbox_ref.dtype)


def prepare_fast_rcnn_params(w_cls, b_cls, w_bbox, b_bbox,
                             compute_dtype=jnp.bfloat16):
    """One-time parameter prep (hoist out of the per-forward path).

    w_cls: (num_classes, C), b_cls: (num_classes,)
    w_bbox: (4*num_classes, C), b_bbox: (4*num_classes,)

    Returns (w_fused (C, K_pad), b_fused (1, K_pad) f32, num_classes, num_bbox)
    where K_pad = round_up(num_classes, 128) + round_up(4*num_classes, 128) so
    each head's columns are lane-aligned in the fused slab.
    """
    num_classes = w_cls.shape[0]
    num_bbox = w_bbox.shape[0]
    nc_pad = _round_up(num_classes, 128)
    nb_pad = _round_up(num_bbox, 128)

    w_cls_t = jnp.pad(jnp.transpose(w_cls), ((0, 0), (0, nc_pad - num_classes)))
    w_bbox_t = jnp.pad(jnp.transpose(w_bbox), ((0, 0), (0, nb_pad - num_bbox)))
    w_fused = jnp.concatenate([w_cls_t, w_bbox_t], axis=1)
    if compute_dtype is not None:
        # bf16 halves W/x HBM traffic and doubles MXU throughput; accumulation
        # inside the kernel stays f32.
        w_fused = w_fused.astype(compute_dtype)

    b_fused = jnp.concatenate(
        [jnp.pad(b_cls, ((0, nc_pad - num_classes),)),
         jnp.pad(b_bbox, ((0, nb_pad - num_bbox),))],
        axis=0).reshape(1, nc_pad + nb_pad).astype(jnp.float32)
    return w_fused, b_fused, num_classes, num_bbox


@functools.partial(jax.jit, static_argnames=("num_classes", "num_bbox", "block_n"))
def fast_rcnn_predictor_fused(x, w_fused, b_fused, *, num_classes, num_bbox,
                              block_n=512):
    """x: (N, C) or (N, C, 1, 1); w_fused: (C, K_pad); b_fused: (1, K_pad) f32.

    Returns (scores (N, num_classes), bbox_deltas (N, 4*num_classes))."""
    if x.ndim == 4:
        # Mirror the PyTorch assert for 4D inputs.
        assert x.shape[2] == 1 and x.shape[3] == 1
        x = x.reshape(x.shape[0], x.shape[1])

    N, C = x.shape
    out_dtype = x.dtype
    nc_pad = _round_up(num_classes, 128)
    k_pad = w_fused.shape[1]

    if N == 0:  # no RoIs after NMS -> nothing to launch
        return (jnp.zeros((0, num_classes), out_dtype),
                jnp.zeros((0, num_bbox), out_dtype))

    # Row tile: multiple of 8 sublanes.  Split N in two when possible so the
    # grid has >= 2 steps and the "parallel" axis feeds both v7x TensorCores;
    # larger tiles (up to block_n=512) amortize per-step overhead on v5e/v6e.
    tn = min(max(8, block_n), max(8, _round_up(pl.cdiv(N, 2), 8)))
    grid = (pl.cdiv(N, tn),)

    x_bytes = jnp.dtype(x.dtype).itemsize
    w_bytes = jnp.dtype(w_fused.dtype).itemsize
    o_bytes = jnp.dtype(out_dtype).itemsize
    cost = pl.CostEstimate(
        flops=2 * N * C * k_pad,
        transcendentals=0,
        bytes_accessed=(N * C * x_bytes + C * k_pad * w_bytes + k_pad * 4
                        + N * (num_classes + num_bbox) * o_bytes),
    )

    kernel = functools.partial(_predictor_kernel, nc_pad=nc_pad)

    scores, bbox_deltas = pl.pallas_call(
        kernel,
        out_shape=(
            jax.ShapeDtypeStruct((N, num_classes), out_dtype),
            jax.ShapeDtypeStruct((N, num_bbox), out_dtype),
        ),
        grid_spec=pltpu.PrefetchScalarGridSpec(
            num_scalar_prefetch=0,
            grid=grid,
            in_specs=[
                # x tile: pipelined / double-buffered across the N grid.
                pl.BlockSpec((tn, C), lambda i: (i, 0)),
                # Fused weights + bias: constant index -> VMEM-resident;
                # single-buffered to halve their VMEM footprint (v7x: 64 MiB).
                pl.BlockSpec((C, k_pad), lambda i: (0, 0),
                             pipeline_mode=pl.Buffered(1)),
                pl.BlockSpec((1, k_pad), lambda i: (0, 0),
                             pipeline_mode=pl.Buffered(1)),
            ],
            out_specs=[
                pl.BlockSpec((tn, num_classes), lambda i: (i, 0)),
                pl.BlockSpec((tn, num_bbox), lambda i: (i, 0)),
            ],
        ),
        compiler_params=pltpu.CompilerParams(
            dimension_semantics=("parallel",),
            vmem_limit_bytes=48 * 1024 * 1024,
        ),
        cost_estimate=cost,
    )(x, w_fused, b_fused)
    return scores, bbox_deltas


def fast_rcnn_predictor(x, w_cls, b_cls, w_bbox, b_bbox, *, block_n=512,
                        compute_dtype=jnp.bfloat16):
    """Drop-in wrapper matching the original (per-head weight) signature.

    For repeated inference, call prepare_fast_rcnn_params once and reuse
    fast_rcnn_predictor_fused directly so the transpose/concat/pad is not
    redone on every forward."""
    w_fused, b_fused, num_classes, num_bbox = prepare_fast_rcnn_params(
        w_cls, b_cls, w_bbox, b_bbox, compute_dtype=compute_dtype)
    return fast_rcnn_predictor_fused(
        x, w_fused, b_fused, num_classes=num_classes, num_bbox=num_bbox,
        block_n=block_n)


def _init_linear_params(key, out_features, in_features, dtype=jnp.float32):
    """Deterministic init mimicking nn.Linear's default (uniform +/- 1/sqrt(fan_in))."""
    kw, kb = jax.random.split(key)
    bound = 1.0 / jnp.sqrt(jnp.asarray(in_features, dtype))
    w = jax.random.uniform(kw, (out_features, in_features), dtype,
                           minval=-bound, maxval=bound)
    b = jax.random.uniform(kb, (out_features,), dtype,
                           minval=-bound, maxval=bound)
    return w, b


if __name__ == "__main__":
    key = jax.random.PRNGKey(0)
    k_x, k_cls, k_bbox = jax.random.split(key, 3)

    N = 10              # RoIs; not a tile multiple -> exercises the partial tile
    in_channels = 32
    num_classes = 8     # including background

    x = jax.random.normal(k_x, (N, in_channels), jnp.float32)
    w_cls, b_cls = _init_linear_params(k_cls, num_classes, in_channels)
    w_bbox, b_bbox = _init_linear_params(k_bbox, num_classes * 4, in_channels)

    # Pure-JAX reference (matches PyTorch nn.Linear: y = x @ W.T + b).
    scores_ref = x @ w_cls.T + b_cls
    bbox_ref = x @ w_bbox.T + b_bbox

    # Default path: bf16 compute, f32 accumulation (looser tolerance).
    w_fused, b_fused, nc, nb = prepare_fast_rcnn_params(w_cls, b_cls, w_bbox, b_bbox)
    scores, bbox_deltas = fast_rcnn_predictor_fused(
        x, w_fused, b_fused, num_classes=nc, num_bbox=nb)
    jax.block_until_ready((scores, bbox_deltas))
    assert scores.shape == (N, num_classes)
    assert bbox_deltas.shape == (N, num_classes * 4)
    assert jnp.allclose(scores, scores_ref, rtol=2e-2, atol=2e-2)
    assert jnp.allclose(bbox_deltas, bbox_ref, rtol=2e-2, atol=2e-2)

    # f32 compute path (tight tolerance vs. the f32 reference).
    wf32, bf32, nc, nb = prepare_fast_rcnn_params(
        w_cls, b_cls, w_bbox, b_bbox, compute_dtype=None)
    s32, d32 = fast_rcnn_predictor_fused(
        x, wf32, bf32, num_classes=nc, num_bbox=nb)
    jax.block_until_ready((s32, d32))
    assert jnp.allclose(s32, scores_ref, atol=1e-5)
    assert jnp.allclose(d32, bbox_ref, atol=1e-5)

    # Drop-in wrapper with the original per-head signature and a 4-D input.
    x4 = x.reshape(N, in_channels, 1, 1)
    s2, b2 = fast_rcnn_predictor(x4, w_cls, b_cls, w_bbox, b_bbox)
    jax.block_until_ready((s2, b2))
    assert jnp.allclose(s2, scores_ref, rtol=2e-2, atol=2e-2)
    assert jnp.allclose(b2, bbox_ref, rtol=2e-2, atol=2e-2)

    # Empty-RoI edge case (N == 0) must not break.
    s0, b0 = fast_rcnn_predictor_fused(
        x[:0], w_fused, b_fused, num_classes=nc, num_bbox=nb)
    jax.block_until_ready((s0, b0))
    assert s0.shape == (0, num_classes) and b0.shape == (0, num_classes * 4)

    print("KERNEL_OK")
</pallas_src>

<mosaic_0001>
module attributes {stable_mosaic.version = 11 : i64} {
  func.func @_predictor_kernel(%arg0: i32, %arg1: memref<8x32xf32, #tpu.memory_space<vmem>>, %arg2: memref<32x256xbf16, #tpu.memory_space<vmem>>, %arg3: memref<1x256xf32, #tpu.memory_space<vmem>>, %arg4: memref<8x8xf32, #tpu.memory_space<vmem>>, %arg5: memref<8x32xf32, #tpu.memory_space<vmem>>) attributes {dimension_semantics = [#tpu.dimension_semantics<parallel>], iteration_bounds = array<i64: 2>, scalar_prefetch = 0 : i64, scratch_operands = 0 : i64, tpu.core_type = #tpu.core_type<tc>, window_params = [{transform_indices = @transform_0, window_bounds = array<i64: 8, 32>}, {pipeline_mode = #tpu.pipeline_mode<synchronous>, transform_indices = @transform_1, window_bounds = array<i64: 32, 256>}, {pipeline_mode = #tpu.pipeline_mode<synchronous>, transform_indices = @transform_2, window_bounds = array<i64: 1, 256>}, {transform_indices = @transform_3, window_bounds = array<i64: 8, 8>}, {transform_indices = @transform_4, window_bounds = array<i64: 8, 32>}]} {
    %c0 = arith.constant 0 : index
    %c0_0 = arith.constant 0 : index
    %0 = vector.load %arg1[%c0, %c0_0] : memref<8x32xf32, #tpu.memory_space<vmem>>, vector<8x32xf32>
    %1 = arith.truncf %0 : vector<8x32xf32> to vector<8x32xbf16>
    %c0_1 = arith.constant 0 : index
    %c0_2 = arith.constant 0 : index
    %2 = vector.load %arg2[%c0_1, %c0_2] : memref<32x256xbf16, #tpu.memory_space<vmem>>, vector<32x256xbf16>
    %cst = arith.constant dense<0.000000e+00> : vector<8x256xf32>
    %3 = tpu.matmul %1, %2, %cst {dimension_numbers = #tpu.dot_dimension_numbers<[1], [0], [0], [1], [0, 0, 1, 1], [], []>} : vector<8x32xbf16>, vector<32x256xbf16>, vector<8x256xf32> -> vector<8x256xf32>
    %c0_3 = arith.constant 0 : index
    %c0_4 = arith.constant 0 : index
    %4 = vector.load %arg3[%c0_3, %c0_4] : memref<1x256xf32, #tpu.memory_space<vmem>>, vector<1x256xf32>
    %5 = vector.broadcast %4 : vector<1x256xf32> to vector<8x256xf32>
    %6 = arith.addf %3, %5 : vector<8x256xf32>
    %7 = vector.extract_strided_slice %6 {offsets = [0, 0], sizes = [8, 8], strides = [1, 1]} : vector<8x256xf32> to vector<8x8xf32>
    %c0_5 = arith.constant 0 : index
    %c0_6 = arith.constant 0 : index
    %8 = vector.load %arg4[%c0_5, %c0_6] : memref<8x8xf32, #tpu.memory_space<vmem>>, vector<8x8xf32>
    tpu.vector_store %arg4[%c0_5, %c0_6], %7 {strides = array<i32>} : memref<8x8xf32, #tpu.memory_space<vmem>>, vector<8x8xf32>,
    %9 = vector.extract_strided_slice %6 {offsets = [0, 128], sizes = [8, 32], strides = [1, 1]} : vector<8x256xf32> to vector<8x32xf32>
    %c0_7 = arith.constant 0 : index
    %c0_8 = arith.constant 0 : index
    %10 = vector.load %arg5[%c0_7, %c0_8] : memref<8x32xf32, #tpu.memory_space<vmem>>, vector<8x32xf32>
    tpu.vector_store %arg5[%c0_7, %c0_8], %9 {strides = array<i32>} : memref<8x32xf32, #tpu.memory_space<vmem>>, vector<8x32xf32>,
    return
  }
  func.func @transform_0(%arg0: i32) -> (i32, i32) {
    %c0_i32 = arith.constant 0 : i32
    %c0_i32_0 = arith.constant 0 : i32
    return %arg0, %c0_i32 : i32, i32
  }
  func.func @transform_1(%arg0: i32) -> (i32, i32) {
    %c0_i32 = arith.constant 0 : i32
    %c0_i32_0 = arith.constant 0 : i32
    %c0_i32_1 = arith.constant 0 : i32
    return %c0_i32, %c0_i32_0 : i32, i32
  }
  func.func @transform_2(%arg0: i32) -> (i32, i32) {
    %c0_i32 = arith.constant 0 : i32
    %c0_i32_0 = arith.constant 0 : i32
    %c0_i32_1 = arith.constant 0 : i32
    return %c0_i32, %c0_i32_0 : i32, i32
  }
  func.func @transform_3(%arg0: i32) -> (i32, i32) {
    %c0_i32 = arith.constant 0 : i32
    %c0_i32_0 = arith.constant 0 : i32
    return %arg0, %c0_i32 : i32, i32
  }
  func.func @transform_4(%arg0: i32) -> (i32, i32) {
    %c0_i32 = arith.constant 0 : i32
    %c0_i32_0 = arith.constant 0 : i32
    return %arg0, %c0_i32 : i32, i32
  }
}

</mosaic_0001>

<bundles_post_ra>
// kernel: fast_rcnn_predictor_fused.1
= control target key start
LH: loop header
LB: loop body
LE: loop exit
PB: predicated region body
PF: predicated region fallthrough
CT: control target
= control target key end

     0   :  { %10 = vsyncpa [#allocation3], 0  ;;  %s915_s0 = inlined_call_operand.hbm [shape: f32[10,32], index: 0, kind: input, shape index: {}]   ;;  %s916_s1 = inlined_call_operand.hbm [shape: bf16[32,256], index: 1, kind: input, shape index: {}]   ;;  %s917_s2 = inlined_call_operand.hbm [shape: f32[1,256], index: 2, kind: input, shape index: {}]   ;;  %s918_s3 = inlined_call_operand.vmem [shape: f32[10,8], index: 3, kind: output, shape index: {0}]   ;;  %s919_s4 = inlined_call_operand.hbm [shape: f32[10,32], index: 4, kind: output, shape index: {1}]  }
   0x1   :  { %12 = vsyncpa [#allocation3 + $0x1], 0 }
   0x2   :  { %13 = vsyncpa [#allocation6], 0 }
   0x3   :  { %14 = vsyncpa [#allocation4], 0 }
   0x4   :  { %16 = vsyncpa [#allocation4 + $0x1], 0  ;;  %s758_s15 = smov 0   ;;  %s760_s16 = smov 0  }
   0x5   :  { %s762_s17 = smov 0   ;;  %s764_s18 = smov 0  }
   0x6 LB: > { %s158_s21 = sshll.u32 %s916_s1, 4  ;;  %s782_s22 = sadd.s32 4294967295, %s727_s18   ;;  %s727_s18 = sphi %s764_s18, %s930_s18   ;;  %s723_s17 = sphi %s762_s17, %s929_s17   ;;  %s719_s16 = sphi %s760_s16, %s928_s16   ;;  %s715_s15 = sphi %s758_s15, %s927_s15   ;;  %s159_s21 = int_to_ptr.hbm [resolvable:$true] %s158_s21 }
   0x7   : > { %p460_p0 = scmp.ge.s32.totalorder %s727_s18, 1  ;;  %p43_p1 = scmp.eq.s32.totalorder %s782_s22, 0 }
   0x8   : > { %p147_p2 = scmp.lt.s32.totalorder %s727_s18, 3  ;;  %s729_s24 = smov [#allocation5]  }
   0x9   : > { %s160_s25 = sshll.u32 %s729_s24, 4  ;;  %s173_s28 = sshll.u32 %s917_s2, 4  ;;  %s161_s25 = int_to_ptr.vmem [resolvable:$true] %s160_s25  ;;  %s174_s28 = int_to_ptr.hbm [resolvable:$true] %s173_s28 }
   0xa   : > { %p787_p3 = pnand %p460_p0, %p147_p2  ;;  %s730_s29 = smov [#allocation7]  }
   0xb   : > { %s175_s30 = sshll.u32 %s730_s29, 4  ;;  %s731_s5 = smov 128   ;;  %s176_s30 = int_to_ptr.vmem [resolvable:$true] %s175_s30 }
   0xc   : > { %p510_p4 = pneg %p787_p3  ;;  %s732_s6 = smov 8  }
   0xd   : > { %s459_s7 = sadd.s32 4294967294, %s727_s18   ;;  %s801_s8 = sadd.s32 1, %s727_s18  }
   0xe   : > { %p511_p6 = pnand %p510_p4, %p43_p1  ;;  %s26_s9 = ssub.s32 %s727_s18, %s801_s8 }
   0xf   : > { %s29_s10 = sadd.s32 1, %s723_s17  ;;  %p27_p7 = scmp.eq.s32.totalorder %s26_s9, 0 }
  0x10   : > { %513 = dma.hbm_to_vmem [thread:$0]  (!%p511_p6), %s159_s21, 512, %s161_s25, [#allocation6], %s731_s5, %s731_s5, %s732_s6  }
  0x11   : > { %516 = dma.hbm_to_vmem [thread:$0]  (!%p511_p6), %s174_s28, 32, %s176_s30, [#allocation6]  }
  0x12   : > { %p36_p8 = scmp.ne.s32.totalorder %s723_s17, %s719_s16  ;;  %p37_p9 = scmp.eq.s32.totalorder %s727_s18, 0 }
  0x13   : > { %p42_p10 = scmp.ne.s32.totalorder %s719_s16, %s715_s15  ;;  %p134_p13 = scmp.eq.s32.totalorder %s782_s22, 1 }
  0x14   : > { %s812_s11 = scalar_select %p27_p7, %s723_s17, %s29_s10  }
  0x15   : > { %p814_p11 = por %p37_p9, %p36_p8  ;;  %p820_p12 = por %p43_p1, %p42_p10 }
  0x16   : > { %p140_p0 = scmp.eq.s32.totalorder %s459_s7, 1  ;;  %p527_p2 = scmp.lt.s32.totalorder %s727_s18, 2 }
  0x17   : > { %s186_s14 = sand.u32 1, %s723_s17   ;;  %p827_p4 = por %p134_p13, %p36_p8 }
  0x18   : > { %p831_p6 = por %p140_p0, %p42_p10  ;;  %s464_s21 = sshll.u32 %s186_s14, 3 }
  0x19   : > { %s465_s24 = sshll.u32 %s727_s18, 3  ;;  %s190_s28 = scalar_lea.vmem [#allocation2], %s464_s21 }
  0x1a   : > { %s194_s27 = scalar_lea.hbm %s915_s0, %s465_s24  ;;  %s198_s29 = sshll.u32 %s190_s28, 4  ;;  %s199_s29 = int_to_ptr.vmem [resolvable:$true] %s198_s29 }
  0x1b   : > { %s196_s30 = sshll.u32 %s194_s27, 4  ;;  %p841_p7 = pnand %p527_p2, %p814_p11  ;;  %s197_s30 = int_to_ptr.hbm [resolvable:$true] %s196_s30 }
  0x1c   : > { %s187_s6 = scalar_lea.sflag [#allocation3], %s186_s14  ;;  %s627_s7 = sshra.s32 %s197_s30, 4  ;;  %s628_s7 = int_to_ptr.hbm [resolvable:$true] %s627_s7 }
  0x1d   : > { %s629_s9 = scalar_lea.hbm %s628_s7, 8  ;;  %p631_p9 = pneg %p841_p7 }
  0x1e   : > { %p630_p8 = scmp.ne.s32.totalorder %s628_s7, %s629_s9  ;;  %s634_s24 = scalar_lea.hbm %s915_s0, 16 }
  0x1f   : > { %p635_p11 = scmp.lt.s32.totalorder %s628_s7, %s915_s0  ;;  %p636_p0 = scmp.lt.s32.totalorder %s634_s24, %s629_s9 }
  0x20   : > { %p632_p10 = pnand %p631_p9, %p630_p8 }
  0x21   : > { %p637_p2 = por %p636_p0, %p635_p11 }
  0x22   : > { %p633_p13 = pneg %p632_p10 }
  0x24   : > { %p638_p5 = pnand %p637_p2, %p633_p13 }
  0x26   : > { %641 = shalt.err (!%p638_p5)
}
  0x27   : > { %520 = dma.hbm_to_vmem [thread:$0]  (!%p841_p7), %s197_s30, 128, %s199_s29, %s187_s6  }
  0x28   : > { %207 = sbr.rel (%p787_p3) target bundleno = 193 (0xc1), region = 32  ;;  %s858_s14 = sand.u32 (!%p787_p3), 1, %s719_s16  }
  0x29   : > { %s467_s26 = sshll.u32 (!%p787_p3), %s858_s14, 3  ;;  %s210_s27 = scalar_lea.sflag (!%p787_p3), [#allocation3], %s858_s14 }
  0x2a   : > { %s213_s28 = scalar_lea.vmem (!%p787_p3), [#allocation2], %s467_s26 }
  0x2d   : > { %702 = dma.done.wait (%p820_p12), %s210_s27, 128  }
  0x2e   : > { %704 = vsyncadd (%p820_p12), %s210_s27, 4294967168 }
  0x2f   : > { %706 = dma.done.wait (%p43_p1), [#allocation6], 544  }
  0x30   : > { %708 = vsyncadd (%p43_p1), [#allocation6], 4294966752  ;;  %v482_v0 = vld [vmem:[#allocation5 + $0x10] sm:$0xf]  ;;  %v497_v1 = vld [vmem:[#allocation5 + $0x14] sm:$0xf0] }
  0x31   : > { %v496_v2 = vld [vmem:[#allocation5 + $0x14] sm:$0xf]  ;;  %v483_v3 = vor.u32 %v497_v1, %v482_v0  ;;  %v484_v4 = vld [vmem:[#allocation5 + $0x18] sm:$0xf0]  ;;  %v474_v5 = vld [vmem:[#allocation5] sm:$0xf] }
  0x32   : > { %v495_v6 = vld [vmem:[#allocation5 + $0x4] sm:$0xf0]  ;;  %v487_v7 = vor.u32 %v496_v2, %v484_v4  ;;  %v494_v8 = vld [vmem:[#allocation5 + $0x4] sm:$0xf]  ;;  %v476_v9 = vld [vmem:[#allocation5 + $0x8] sm:$0xf0] }
  0x33   : > { %300 = vmatpush.bf16.msra.mxu0 %v483_v3  ;;  %v475_v10 = vor.u32 %v495_v6, %v474_v5  ;;  %v258_v11 = vld [vmem:[%s213_s28] sm:$0xff]  ;;  %v479_v12 = vor.u32 %v494_v8, %v476_v9  ;;  %vm290_vm0 = vcmask 261120   ;;  %p253_p1 = scmp.lt.s32.totalorder %s782_s22, 1  ;;  %s491_s13 = sshll.u32 %s782_s22, 3  ;;  %v264_v14 = vld [vmem:[#allocation7] sm:$0x3] }
  0x34   : > { %313 = vmatpush.bf16.msra.mxu1 %v487_v7  ;;  %v259_v13 = vpack.c.bf16 %v258_v11, %v258_v11  ;;  %s341_s5 = scalar_lea.hbm %s919_s4, %s491_s13  ;;  %v266_v15 = vperm.slane %v264_v14, 0  ;;  %v267_v16 = vperm.slane %v264_v14, 1  ;;  %s252_s7 = scalar_lea.vmem [#allocation8], %s467_s26  ;;  %vm320_vm1 = vcmask 64512  }
  0x35   : > { %s254_s23 = scalar_select %p253_p1, %s782_s22, 1 }
  0x36   : > { %s343_s9 = sshll.u32 %s252_s7, 4  ;;  %s345_s10 = sshll.u32 %s341_s5, 4  ;;  %s344_s9 = int_to_ptr.vmem [resolvable:$true] %s343_s9  ;;  %s346_s10 = int_to_ptr.hbm [resolvable:$true] %s345_s10 }
  0x37   : > { %301 = vmatpush.bf16.msra.mxu0 %v475_v10  ;;  %s471_s6 = sshll.u32 %s254_s23, 3  ;;  %s328_s22 = scalar_lea.sflag [#allocation4], %s858_s14 }
  0x38   : > { %314 = vmatpush.bf16.msra.mxu1 %v479_v12  ;;  %s256_s25 = scalar_lea.vmem %s918_s3, %s471_s6  ;;  %s671_s12 = sshra.s32 %s346_s10, 4  ;;  %s672_s12 = int_to_ptr.hbm [resolvable:$true] %s671_s12 }
  0x39   : > { %s673_s26 = scalar_lea.hbm %s672_s12, 8  ;;  %s677_s23 = scalar_lea.hbm %s919_s4, 16 }
  0x3a   : > { %488 = vmatmul.msk.bf16.vlgmr.msra.gmra.mxu0 %vm290_vm0, %v259_v13  ;;  %p674_p3 = scmp.ne.s32.totalorder %s672_s12, %s673_s26  ;;  %p678_p7 = scmp.lt.s32.totalorder %s672_s12, %s919_s4 }
  0x3b   : > { %489 = vmatmul.msk.bf16.vlgmr.msra.gmra.mxu1 %vm290_vm0, %v259_v13  ;;  %p679_p8 = scmp.lt.s32.totalorder %s677_s23, %s673_s26 }
  0x3c   : > { %p675_p5 = pnand %p674_p3, %p827_p4 }
  0x3d   : > { %p680_p9 = por %p679_p8, %p678_p7 }
  0x3e   : > { %p676_p12 = pneg %p675_p5 }
  0x40   : > { %p681_p10 = pnand %p680_p9, %p676_p12 }
  0xb7   : > { %v303_v17 = vpop.f32.mrf.mxu0 }
  0xb8   : > { %v304_v18 = vadd.f32 %v303_v17, %v266_v15  ;;  %v316_v19 = vpop.f32.mrf.mxu1 }
  0xb9   : > { %v317_v20 = vadd.f32 %v316_v19, %v267_v16 }
  0xba   : > { %321 = vst.msk [vmem:[%s256_s25] sm:$0xff] %vm320_vm1, %v304_v18 }
  0xbb   : > { %322 = vst.msk [vmem:[%s252_s7] sm:$0xff] %vm290_vm0, %v317_v20 }
  0xbc   : > { %684 = shalt.err (!%p681_p10)
}
  0xbd   : > { %508 = dma.vmem_to_hbm [thread:$0]  (%p827_p4), %s344_s9, 128, %s346_s10, %s328_s22  }
  0xbf   : > { %v305_v21 = vpop.f32.mrf.mxu0 }
  0xc0   : > { %v318_v22 = vpop.f32.mrf.mxu1 }
  0xc1 PF: > { %s364_s14 = sand.u32 1, %s715_s15   ;;  %p926_p13 = scmp.ge.s32.totalorder %s727_s18, 2 }
  0xc2   : > { %s365_s30 = scalar_lea.sflag [#allocation4], %s364_s14 }
  0xc3   : > { %p522_p11 = pnand %p926_p13, %p831_p6 }
  0xc5   : > { %p523_p0 = pneg %p522_p11 }
  0xc7   : > { %710 = dma.done.wait (%p523_p0), %s365_s30, 128  }
  0xc8   : > { %712 = vsyncadd (%p523_p0), %s365_s30, 4294967168  ;;  %p19_p4 = scmp.ge.s32.totalorder %s801_s8, 4   ;;  %s927_s15 = smov %s719_s16 }
  0xc9   : > { %s928_s16 = smov %s723_s17  ;;  %s929_s17 = smov %s812_s11 }
  0xca   : > { %s930_s18 = smov %s801_s8  ;;  %21 = sbr.rel (!%p19_p4) target bundleno = 6 (0x6), region = 97 }
  0xcf   :  { %371 = vsyncpa [#allocation3], 1 }
  0xd0   :  { %373 = vsyncpa [#allocation3 + $0x1], 1 }
  0xd1   :  { %374 = vsyncpa [#allocation6], 1 }
  0xd2   :  { %375 = vsyncpa [#allocation4], 1 }
  0xd3   :  { %377 = vsyncpa [#allocation4 + $0x1], 1 }

</bundles_post_ra>
